<compile_context>
chip_gen: v5e
topology: v5e:2x2
jax: 0.10.0
libtpu: 0.0.40
codegen_flags: <defaults>
</compile_context>

<pallas_src>
import functools

import numpy as np
import jax
import jax.numpy as jnp
from jax.experimental import pallas as pl
from jax.experimental.pallas import tpu as pltpu

BN_EPS = 1e-5
PPM_SCALES = (1, 2, 3, 6)


# ----------------------------- helpers (host) ------------------------------
def _adaptive_avg_pool_matrix(out_size, in_size):
    """P[i, h] = 1/|region_i| for h in region_i (matches nn.AdaptiveAvgPool2d)."""
    P = np.zeros((out_size, in_size), dtype=np.float32)
    for i in range(out_size):
        start = (i * in_size) // out_size
        end = -(-((i + 1) * in_size) // out_size)  # ceil
        P[i, start:end] = 1.0 / (end - start)
    return P


def _bilinear_upsample_matrix(out_size, in_size):
    """U[y, i]: 1-D bilinear interp weights, align_corners=False (F.interpolate)."""
    U = np.zeros((out_size, in_size), dtype=np.float32)
    scale = in_size / out_size
    for y in range(out_size):
        src = (y + 0.5) * scale - 0.5
        src = max(src, 0.0)
        i0 = min(int(np.floor(src)), in_size - 1)
        i1 = min(i0 + 1, in_size - 1)
        l1 = src - i0
        U[y, i0] += 1.0 - l1
        U[y, i1] += l1
    return U


@functools.lru_cache(maxsize=None)
def _ppm_matrices(H, W):
    """Pool (HW, ss_pad) and upsample (ss_pad, HW) matrices per scale, cached."""
    HW = H * W
    mts, uts = [], []
    for s in PPM_SCALES:
        ss = s * s
        ss_pad = -(-ss // 8) * 8  # minimal multiple of 8 (don't over-pad to 128)
        Ph = _adaptive_avg_pool_matrix(s, H)
        Pw = _adaptive_avg_pool_matrix(s, W)
        Uh = _bilinear_upsample_matrix(H, s)
        Uw = _bilinear_upsample_matrix(W, s)
        M = np.kron(Ph, Pw)  # (ss, HW): pooled_flat = feat_flat @ M.T
        U = np.kron(Uh, Uw)  # (HW, ss): up_flat     = act       @ U.T
        Mt = np.zeros((HW, ss_pad), np.float32); Mt[:, :ss] = M.T
        Ut = np.zeros((ss_pad, HW), np.float32); Ut[:ss, :] = U.T
        mts.append(jnp.asarray(Mt))
        uts.append(jnp.asarray(Ut))
    return tuple(mts), tuple(uts)


# ------------------------------ Pallas kernel ------------------------------
def _make_fused_ppm_kernel(C, Cout, n_scales):
    def kernel(x_ref, w_ref, *rest):
        # x_ref : (1, C, HW)            one batch element, spatial flattened
        # w_ref : (n*Cout, C)           BN-folded 1x1 conv weights, all scales
        # rest  : n pool mats (HW, ss_pad_s), n upsample mats (ss_pad_s, HW),
        #         then o_ref (1, C + n*Cout, HW)
        mt_refs = rest[:n_scales]
        ut_refs = rest[n_scales:2 * n_scales]
        o_ref = rest[2 * n_scales]

        xb = x_ref[0]                                                      # (C, HW)
        # conv-first (commutes with the pool); BN scale already folded into w
        y = jnp.dot(w_ref[...], xb, preferred_element_type=jnp.float32)   # (n*Cout, HW)

        parts = [xb.astype(jnp.float32)]                                   # pass-through
        for s in range(n_scales):
            ys = y[s * Cout:(s + 1) * Cout, :]                             # (Cout, HW)
            pooled = jnp.dot(ys, mt_refs[s][...],
                             preferred_element_type=jnp.float32)           # (Cout, ss_pad)
            act = jnp.maximum(pooled, 0.0)                                 # ReLU
            up = jnp.dot(act, ut_refs[s][...],
                         preferred_element_type=jnp.float32)               # (Cout, HW)
            parts.append(up)

        # single lane/sublane-dense store of the fused (concat) result
        o_ref[0] = jnp.concatenate(parts, axis=0).astype(o_ref.dtype)

    return kernel


def ppm_forward(x, scale_weights):
    """Fused PPM: concat([x] + 4 branches) along channels, one pallas_call."""
    B, C, H, W = x.shape
    HW = H * W
    Cout = scale_weights[0].shape[0]
    n = len(PPM_SCALES)
    Ctot = C + n * Cout

    mts, uts = _ppm_matrices(H, W)
    # fold BN (eval, weight=1, bias=0, mean=0, var=1) into the conv weights
    bn_scale = np.float32(1.0 / np.sqrt(1.0 + BN_EPS))
    w_all = jnp.concatenate(scale_weights, axis=0) * bn_scale              # (n*Cout, C)

    x_flat = x.reshape(B, C, HW)

    in_specs = [
        pl.BlockSpec((1, C, HW), lambda b: (b, 0, 0)),
        pl.BlockSpec((n * Cout, C), lambda b: (0, 0)),
    ]
    in_specs += [pl.BlockSpec(m.shape, lambda b: (0, 0)) for m in mts]
    in_specs += [pl.BlockSpec(u.shape, lambda b: (0, 0)) for u in uts]

    out = pl.pallas_call(
        _make_fused_ppm_kernel(C, Cout, n),
        out_shape=jax.ShapeDtypeStruct((B, Ctot, HW), x.dtype),
        grid_spec=pltpu.PrefetchScalarGridSpec(
            num_scalar_prefetch=0,
            grid=(B,),
            in_specs=in_specs,
            out_specs=pl.BlockSpec((1, Ctot, HW), lambda b: (b, 0, 0)),
        ),
        compiler_params=pltpu.CompilerParams(dimension_semantics=("parallel",)),
    )(x_flat, w_all, *mts, *uts)
    return out.reshape(B, Ctot, H, W)


def skip_module_simple_forward(image, in_features, ppm_weights,
                               last_stage=4, if_ppm=True):
    out = {f"stage{i}": in_features[f"stage{i}"] for i in range(1, last_stage + 1)}
    if if_ppm:
        out[f"stage{last_stage}"] = ppm_forward(out[f"stage{last_stage}"], ppm_weights)
    out["stage0"] = image
    return out


# --------------------------- pure-JAX reference ----------------------------
def _ppm_scale_ref(x, w, scale):
    B, C, H, W = x.shape
    Ph = _adaptive_avg_pool_matrix(scale, H)
    Pw = _adaptive_avg_pool_matrix(scale, W)
    Uh = _bilinear_upsample_matrix(H, scale)
    Uw = _bilinear_upsample_matrix(W, scale)
    pooled = jnp.einsum("ih,bchw,jw->bcij", Ph, x, Pw)
    conv = jnp.einsum("oc,bcij->boij", w, pooled)
    act = jnp.maximum(conv / np.sqrt(1.0 + BN_EPS), 0.0)
    return jnp.einsum("yi,boij,xj->boyx", Uh, act, Uw)


# ----------------------------------- main -----------------------------------
if __name__ == "__main__":
    key = jax.random.PRNGKey(0)
    k_img, k1, k2, k3, k4, kw = jax.random.split(key, 6)

    # Small shapes consistent with the module (NCHW, image_channel=4).
    image = jax.random.normal(k_img, (2, 4, 16, 16), jnp.float32)
    in_features = {
        "stage1": jax.random.normal(k1, (2, 4, 16, 16), jnp.float32),
        "stage2": jax.random.normal(k2, (2, 8, 8, 8), jnp.float32),
        "stage3": jax.random.normal(k3, (2, 8, 8, 8), jnp.float32),
        "stage4": jax.random.normal(k4, (2, 8, 16, 16), jnp.float32),
    }

    # PPM 1x1 conv weights (xavier_uniform, deterministic), one per scale.
    in_dim = in_features["stage4"].shape[1]
    out_dim = in_dim // 4
    bound = float(np.sqrt(6.0 / (in_dim + out_dim)))
    wkeys = jax.random.split(kw, len(PPM_SCALES))
    ppm_weights = [
        jax.random.uniform(k, (out_dim, in_dim), jnp.float32, -bound, bound)
        for k in wkeys
    ]

    out = skip_module_simple_forward(image, in_features, ppm_weights)
    out = jax.tree_util.tree_map(jax.block_until_ready, out)

    # Sanity: shapes + numerical check of the PPM stage against pure-JAX ref.
    assert out["stage0"].shape == (2, 4, 16, 16)
    assert out["stage4"].shape == (2, 2 * in_dim, 16, 16)
    ref_stage4 = jnp.concatenate(
        [in_features["stage4"]]
        + [_ppm_scale_ref(in_features["stage4"], w, s)
           for s, w in zip(PPM_SCALES, ppm_weights)],
        axis=1,
    )
    np.testing.assert_allclose(np.asarray(out["stage4"]), np.asarray(ref_stage4),
                               rtol=1e-4, atol=1e-5)

    print("KERNEL_OK")
</pallas_src>

<mosaic_0001>
module attributes {stable_mosaic.version = 11 : i64} {
  func.func @kernel(%arg0: i32, %arg1: memref<1x8x256xf32, #tpu.memory_space<vmem>>, %arg2: memref<8x8xf32, #tpu.memory_space<vmem>>, %arg3: memref<256x8xf32, #tpu.memory_space<vmem>>, %arg4: memref<256x8xf32, #tpu.memory_space<vmem>>, %arg5: memref<256x16xf32, #tpu.memory_space<vmem>>, %arg6: memref<256x40xf32, #tpu.memory_space<vmem>>, %arg7: memref<8x256xf32, #tpu.memory_space<vmem>>, %arg8: memref<8x256xf32, #tpu.memory_space<vmem>>, %arg9: memref<16x256xf32, #tpu.memory_space<vmem>>, %arg10: memref<40x256xf32, #tpu.memory_space<vmem>>, %arg11: memref<1x16x256xf32, #tpu.memory_space<vmem>>) attributes {dimension_semantics = [#tpu.dimension_semantics<parallel>], iteration_bounds = array<i64: 2>, scalar_prefetch = 0 : i64, scratch_operands = 0 : i64, tpu.core_type = #tpu.core_type<tc>, window_params = [{transform_indices = @transform_0, window_bounds = array<i64: 1, 8, 256>}, {pipeline_mode = #tpu.pipeline_mode<synchronous>, transform_indices = @transform_1, window_bounds = array<i64: 8, 8>}, {pipeline_mode = #tpu.pipeline_mode<synchronous>, transform_indices = @transform_2, window_bounds = array<i64: 256, 8>}, {pipeline_mode = #tpu.pipeline_mode<synchronous>, transform_indices = @transform_3, window_bounds = array<i64: 256, 8>}, {pipeline_mode = #tpu.pipeline_mode<synchronous>, transform_indices = @transform_4, window_bounds = array<i64: 256, 16>}, {pipeline_mode = #tpu.pipeline_mode<synchronous>, transform_indices = @transform_5, window_bounds = array<i64: 256, 40>}, {pipeline_mode = #tpu.pipeline_mode<synchronous>, transform_indices = @transform_6, window_bounds = array<i64: 8, 256>}, {pipeline_mode = #tpu.pipeline_mode<synchronous>, transform_indices = @transform_7, window_bounds = array<i64: 8, 256>}, {pipeline_mode = #tpu.pipeline_mode<synchronous>, transform_indices = @transform_8, window_bounds = array<i64: 16, 256>}, {pipeline_mode = #tpu.pipeline_mode<synchronous>, transform_indices = @transform_9, window_bounds = array<i64: 40, 256>}, {transform_indices = @transform_10, window_bounds = array<i64: 1, 16, 256>}]} {
    %c0 = arith.constant 0 : index
    %c0_0 = arith.constant 0 : index
    %c0_1 = arith.constant 0 : index
    %0 = vector.load %arg1[%c0, %c0_0, %c0_1] : memref<1x8x256xf32, #tpu.memory_space<vmem>>, vector<1x8x256xf32>
    %1 = vector.shape_cast %0 : vector<1x8x256xf32> to vector<8x256xf32>
    %c0_2 = arith.constant 0 : index
    %c0_3 = arith.constant 0 : index
    %2 = vector.load %arg2[%c0_2, %c0_3] : memref<8x8xf32, #tpu.memory_space<vmem>>, vector<8x8xf32>
    %cst = arith.constant dense<0.000000e+00> : vector<8x256xf32>
    %3 = tpu.matmul %2, %1, %cst {dimension_numbers = #tpu.dot_dimension_numbers<[1], [0], [0], [1], [0, 0, 1, 1], [], []>} : vector<8x8xf32>, vector<8x256xf32>, vector<8x256xf32> -> vector<8x256xf32>
    %4 = vector.extract_strided_slice %3 {offsets = [0, 0], sizes = [2, 256], strides = [1, 1]} : vector<8x256xf32> to vector<2x256xf32>
    %c0_4 = arith.constant 0 : index
    %c0_5 = arith.constant 0 : index
    %5 = vector.load %arg3[%c0_4, %c0_5] : memref<256x8xf32, #tpu.memory_space<vmem>>, vector<256x8xf32>
    %cst_6 = arith.constant dense<0.000000e+00> : vector<2x8xf32>
    %6 = tpu.matmul %4, %5, %cst_6 {dimension_numbers = #tpu.dot_dimension_numbers<[1], [0], [0], [1], [0, 0, 1, 1], [], []>} : vector<2x256xf32>, vector<256x8xf32>, vector<2x8xf32> -> vector<2x8xf32>
    %cst_7 = arith.constant 0.000000e+00 : f32
    %7 = vector.broadcast %cst_7 : f32 to vector<2x8xf32>
    %8 = arith.maximumf %6, %7 : vector<2x8xf32>
    %c0_8 = arith.constant 0 : index
    %c0_9 = arith.constant 0 : index
    %9 = vector.load %arg7[%c0_8, %c0_9] : memref<8x256xf32, #tpu.memory_space<vmem>>, vector<8x256xf32>
    %cst_10 = arith.constant dense<0.000000e+00> : vector<2x256xf32>
    %10 = tpu.matmul %8, %9, %cst_10 {dimension_numbers = #tpu.dot_dimension_numbers<[1], [0], [0], [1], [0, 0, 1, 1], [], []>} : vector<2x8xf32>, vector<8x256xf32>, vector<2x256xf32> -> vector<2x256xf32>
    %11 = vector.extract_strided_slice %3 {offsets = [2, 0], sizes = [2, 256], strides = [1, 1]} : vector<8x256xf32> to vector<2x256xf32>
    %c0_11 = arith.constant 0 : index
    %c0_12 = arith.constant 0 : index
    %12 = vector.load %arg4[%c0_11, %c0_12] : memref<256x8xf32, #tpu.memory_space<vmem>>, vector<256x8xf32>
    %cst_13 = arith.constant dense<0.000000e+00> : vector<2x8xf32>
    %13 = tpu.matmul %11, %12, %cst_13 {dimension_numbers = #tpu.dot_dimension_numbers<[1], [0], [0], [1], [0, 0, 1, 1], [], []>} : vector<2x256xf32>, vector<256x8xf32>, vector<2x8xf32> -> vector<2x8xf32>
    %cst_14 = arith.constant 0.000000e+00 : f32
    %14 = vector.broadcast %cst_14 : f32 to vector<2x8xf32>
    %15 = arith.maximumf %13, %14 : vector<2x8xf32>
    %c0_15 = arith.constant 0 : index
    %c0_16 = arith.constant 0 : index
    %16 = vector.load %arg8[%c0_15, %c0_16] : memref<8x256xf32, #tpu.memory_space<vmem>>, vector<8x256xf32>
    %cst_17 = arith.constant dense<0.000000e+00> : vector<2x256xf32>
    %17 = tpu.matmul %15, %16, %cst_17 {dimension_numbers = #tpu.dot_dimension_numbers<[1], [0], [0], [1], [0, 0, 1, 1], [], []>} : vector<2x8xf32>, vector<8x256xf32>, vector<2x256xf32> -> vector<2x256xf32>
    %18 = vector.extract_strided_slice %3 {offsets = [4, 0], sizes = [2, 256], strides = [1, 1]} : vector<8x256xf32> to vector<2x256xf32>
    %c0_18 = arith.constant 0 : index
    %c0_19 = arith.constant 0 : index
    %19 = vector.load %arg5[%c0_18, %c0_19] : memref<256x16xf32, #tpu.memory_space<vmem>>, vector<256x16xf32>
    %cst_20 = arith.constant dense<0.000000e+00> : vector<2x16xf32>
    %20 = tpu.matmul %18, %19, %cst_20 {dimension_numbers = #tpu.dot_dimension_numbers<[1], [0], [0], [1], [0, 0, 1, 1], [], []>} : vector<2x256xf32>, vector<256x16xf32>, vector<2x16xf32> -> vector<2x16xf32>
    %cst_21 = arith.constant 0.000000e+00 : f32
    %21 = vector.broadcast %cst_21 : f32 to vector<2x16xf32>
    %22 = arith.maximumf %20, %21 : vector<2x16xf32>
    %c0_22 = arith.constant 0 : index
    %c0_23 = arith.constant 0 : index
    %23 = vector.load %arg9[%c0_22, %c0_23] : memref<16x256xf32, #tpu.memory_space<vmem>>, vector<16x256xf32>
    %cst_24 = arith.constant dense<0.000000e+00> : vector<2x256xf32>
    %24 = tpu.matmul %22, %23, %cst_24 {dimension_numbers = #tpu.dot_dimension_numbers<[1], [0], [0], [1], [0, 0, 1, 1], [], []>} : vector<2x16xf32>, vector<16x256xf32>, vector<2x256xf32> -> vector<2x256xf32>
    %25 = vector.extract_strided_slice %3 {offsets = [6, 0], sizes = [2, 256], strides = [1, 1]} : vector<8x256xf32> to vector<2x256xf32>
    %c0_25 = arith.constant 0 : index
    %c0_26 = arith.constant 0 : index
    %26 = vector.load %arg6[%c0_25, %c0_26] : memref<256x40xf32, #tpu.memory_space<vmem>>, vector<256x40xf32>
    %cst_27 = arith.constant dense<0.000000e+00> : vector<2x40xf32>
    %27 = tpu.matmul %25, %26, %cst_27 {dimension_numbers = #tpu.dot_dimension_numbers<[1], [0], [0], [1], [0, 0, 1, 1], [], []>} : vector<2x256xf32>, vector<256x40xf32>, vector<2x40xf32> -> vector<2x40xf32>
    %cst_28 = arith.constant 0.000000e+00 : f32
    %28 = vector.broadcast %cst_28 : f32 to vector<2x40xf32>
    %29 = arith.maximumf %27, %28 : vector<2x40xf32>
    %c0_29 = arith.constant 0 : index
    %c0_30 = arith.constant 0 : index
    %30 = vector.load %arg10[%c0_29, %c0_30] : memref<40x256xf32, #tpu.memory_space<vmem>>, vector<40x256xf32>
    %cst_31 = arith.constant dense<0.000000e+00> : vector<2x256xf32>
    %31 = tpu.matmul %29, %30, %cst_31 {dimension_numbers = #tpu.dot_dimension_numbers<[1], [0], [0], [1], [0, 0, 1, 1], [], []>} : vector<2x40xf32>, vector<40x256xf32>, vector<2x256xf32> -> vector<2x256xf32>
    %32 = tpu.concatenate %1, %10, %17, %24, %31 in 0 : vector<8x256xf32>, vector<2x256xf32>, vector<2x256xf32>, vector<2x256xf32>, vector<2x256xf32> -> vector<16x256xf32>
    %c0_32 = arith.constant 0 : index
    %c0_33 = arith.constant 0 : index
    %c0_34 = arith.constant 0 : index
    %33 = vector.load %arg11[%c0_32, %c0_33, %c0_34] : memref<1x16x256xf32, #tpu.memory_space<vmem>>, vector<1x16x256xf32>
    %34 = vector.shape_cast %33 : vector<1x16x256xf32> to vector<16x256xf32>
    %35 = vector.shape_cast %32 : vector<16x256xf32> to vector<1x16x256xf32>
    tpu.vector_store %arg11[%c0_32, %c0_33, %c0_34], %35 {strides = array<i32>} : memref<1x16x256xf32, #tpu.memory_space<vmem>>, vector<1x16x256xf32>,
    return
  }
  func.func @transform_0(%arg0: i32) -> (i32, i32, i32) {
    %c0_i32 = arith.constant 0 : i32
    %c0_i32_0 = arith.constant 0 : i32
    %c0_i32_1 = arith.constant 0 : i32
    return %arg0, %c0_i32, %c0_i32_0 : i32, i32, i32
  }
  func.func @transform_1(%arg0: i32) -> (i32, i32) {
    %c0_i32 = arith.constant 0 : i32
    %c0_i32_0 = arith.constant 0 : i32
    %c0_i32_1 = arith.constant 0 : i32
    return %c0_i32, %c0_i32_0 : i32, i32
  }
  func.func @transform_2(%arg0: i32) -> (i32, i32) {
    %c0_i32 = arith.constant 0 : i32
    %c0_i32_0 = arith.constant 0 : i32
    %c0_i32_1 = arith.constant 0 : i32
    return %c0_i32, %c0_i32_0 : i32, i32
  }
  func.func @transform_3(%arg0: i32) -> (i32, i32) {
    %c0_i32 = arith.constant 0 : i32
    %c0_i32_0 = arith.constant 0 : i32
    %c0_i32_1 = arith.constant 0 : i32
    return %c0_i32, %c0_i32_0 : i32, i32
  }
  func.func @transform_4(%arg0: i32) -> (i32, i32) {
    %c0_i32 = arith.constant 0 : i32
    %c0_i32_0 = arith.constant 0 : i32
    %c0_i32_1 = arith.constant 0 : i32
    return %c0_i32, %c0_i32_0 : i32, i32
  }
  func.func @transform_5(%arg0: i32) -> (i32, i32) {
    %c0_i32 = arith.constant 0 : i32
    %c0_i32_0 = arith.constant 0 : i32
    %c0_i32_1 = arith.constant 0 : i32
    return %c0_i32, %c0_i32_0 : i32, i32
  }
  func.func @transform_6(%arg0: i32) -> (i32, i32) {
    %c0_i32 = arith.constant 0 : i32
    %c0_i32_0 = arith.constant 0 : i32
    %c0_i32_1 = arith.constant 0 : i32
    return %c0_i32, %c0_i32_0 : i32, i32
  }
  func.func @transform_7(%arg0: i32) -> (i32, i32) {
    %c0_i32 = arith.constant 0 : i32
    %c0_i32_0 = arith.constant 0 : i32
    %c0_i32_1 = arith.constant 0 : i32
    return %c0_i32, %c0_i32_0 : i32, i32
  }
  func.func @transform_8(%arg0: i32) -> (i32, i32) {
    %c0_i32 = arith.constant 0 : i32
    %c0_i32_0 = arith.constant 0 : i32
    %c0_i32_1 = arith.constant 0 : i32
    return %c0_i32, %c0_i32_0 : i32, i32
  }
  func.func @transform_9(%arg0: i32) -> (i32, i32) {
    %c0_i32 = arith.constant 0 : i32
    %c0_i32_0 = arith.constant 0 : i32
    %c0_i32_1 = arith.constant 0 : i32
    return %c0_i32, %c0_i32_0 : i32, i32
  }
  func.func @transform_10(%arg0: i32) -> (i32, i32, i32) {
    %c0_i32 = arith.constant 0 : i32
    %c0_i32_0 = arith.constant 0 : i32
    %c0_i32_1 = arith.constant 0 : i32
    return %arg0, %c0_i32, %c0_i32_0 : i32, i32, i32
  }
}

</mosaic_0001>

<bundles_post_ra>
// kernel: tpu_custom_call.1
= control target key start
LH: loop header
LB: loop body
LE: loop exit
PB: predicated region body
PF: predicated region fallthrough
CT: control target
= control target key end

     0   :  { %15 = vsyncpa [#allocation3], 0  ;;  %s1759_s0 = inlined_call_operand.vmem [shape: f32[2,8,256], index: 0, kind: input, shape index: {}]   ;;  %s1760_s1 = inlined_call_operand.vmem [shape: f32[8,8], index: 1, kind: input, shape index: {}]   ;;  %s1761_s2 = inlined_call_operand.vmem [shape: f32[256,8], index: 2, kind: input, shape index: {}]   ;;  %s1762_s3 = inlined_call_operand.vmem [shape: f32[256,8], index: 3, kind: input, shape index: {}]   ;;  %s1763_s4 = inlined_call_operand.vmem [shape: f32[256,16], index: 4, kind: input, shape index: {}]   ;;  %s1764_s5 = inlined_call_operand.vmem [shape: f32[256,40], index: 5, kind: input, shape index: {}]   ;;  %s1765_s6 = inlined_call_operand.vmem [shape: f32[8,256], index: 6, kind: input, shape index: {}]   ;;  %s1766_s7 = inlined_call_operand.vmem [shape: f32[8,256], index: 7, kind: input, shape index: {}]   ;;  %s1767_s8 = inlined_call_operand.vmem [shape: f32[16,256], index: 8, kind: input, shape index: {}]   ;;  %s1768_s9 = inlined_call_operand.vmem [shape: f32[40,256], index: 9, kind: input, shape index: {}]   ;;  %s1769_s10 = inlined_call_operand.hbm [shape: f32[2,16,256], index: 10, kind: output, shape index: {}]  }
   0x1   :  { %17 = vsyncpa [#allocation3 + $0x1], 0  ;;  %s1198_s13 = smov 0   ;;  %s1200_s14 = smov 0  }
   0x2   :  { %s1202_s15 = smov 0   ;;  %s1204_s16 = smov 0  }
   0x3 LB: > { %1774 = sst [smem:[#allocation5_spill]] %s1135_s15  ;;  %s1219_s17 = sadd.s32 4294967295, %s1139_s16   ;;  %s1139_s16 = sphi %s1204_s16, %s1780_s16   ;;  %s1135_s15 = sphi %s1202_s15, %s1782_s15   ;;  %s1131_s14 = sphi %s1200_s14, %s1784_s14   ;;  %s1127_s13 = sphi %s1198_s13, %s1783_s13  }
   0x4   : > { %s1012_s18 = sadd.s32 4294967294, %s1139_s16   ;;  %s1223_s19 = sadd.s32 1, %s1139_s16  }
   0x5   : > { %1775 = sst [smem:[#allocation6_spill]] %s1223_s19  ;;  %s245_s20 = sadd.s32 1, %s1135_s15 }
   0x6   : > { %s242_s21 = ssub.s32 %s1139_s16, %s1223_s19  ;;  %p255_p0 = scmp.ne.s32.totalorder %s1135_s15, %s1131_s14 }
   0x7   : > { %p243_p1 = scmp.eq.s32.totalorder %s242_s21, 0  ;;  %p256_p2 = scmp.eq.s32.totalorder %s1219_s17, 1 }
   0x8   : > { %p261_p3 = scmp.ne.s32.totalorder %s1131_s14, %s1127_s13  ;;  %p262_p4 = scmp.eq.s32.totalorder %s1012_s18, 1 }
   0x9   : > { %s1234_s22 = scalar_select %p243_p1, %s1135_s15, %s245_s20  }
   0xa   : > { %p1236_p5 = por %p256_p2, %p255_p0  ;;  %p1240_p6 = por %p262_p4, %p261_p3 }
   0xb   : > { %1776 = sst [smem:[#allocation7_spill]] %s1234_s22  ;;  %p1015_p7 = scmp.ge.s32.totalorder %s1139_s16, 1 }
   0xc   : > { %p315_p8 = scmp.lt.s32.totalorder %s1139_s16, 3 }
   0xe   : > { %p316_p9 = pnand %p1015_p7, %p315_p8 }
   0xf   : > { %s1770_s25 = sand.u32 (!%p316_p9), 1, %s1131_s14   ;;  %p353_p10 = scmp.lt.s32.totalorder (!%p316_p9), %s1219_s17, 1 }
  0x10   : > { %319 = sbr.rel (%p316_p9) target bundleno = 851 (0x353), region = 60  ;;  %s1016_s20 = sshll.u32 (!%p316_p9), %s1770_s25, 5 }
  0x11   : > { %s1287_s30 = scalar_lea.vmem (!%p316_p9), [#allocation2], %s1016_s20  ;;  %s1035_s29 = sshll.u32 (!%p316_p9), %s1219_s17, 5 }
  0x12   : > { %s947_s11 = sshll.u32 (!%p316_p9), %s1287_s30, 4  ;;  %s1779_s12 = sand.u32 (!%p316_p9), 1, %s1131_s14   ;;  %s948_s11 = int_to_ptr.vmem [resolvable:$true] %s947_s11 }
  0x13   : > { %s1097_s27 = scalar_lea.hbm (!%p316_p9), %s1769_s10, 64 }
  0x15   : > { %v420_v0 = vld [vmem:[%s1761_s2 + $0x78] sm:$0xff]  ;;  %v419_v2 = vld [vmem:[%s1761_s2 + $0x70] sm:$0xff]  ;;  %v418_v4 = vld [vmem:[%s1761_s2 + $0x68] sm:$0xff]  ;;  %s354_s28 = scalar_select %p353_p10, %s1219_s17, 1  ;;  %vm361_vm0 = vcmask 64512   ;;  %vm728_vm1 = vcmask 130048  }
  0x16   : > { %v436_v1 = vld [vmem:[%s1761_s2 + $0xf8] sm:$0xff]  ;;  %437 = vmatpush.msra.mxu2 %v420_v0  ;;  %v435_v3 = vld [vmem:[%s1761_s2 + $0xf0] sm:$0xff]  ;;  %v434_v5 = vld [vmem:[%s1761_s2 + $0xe8] sm:$0xff]  ;;  %vm921_vm2 = vcmask 1041408   ;;  %vm924_vm3 = vcmask 1043456   ;;  %vm859_vm4 = vcmask 326656  }
  0x17   : > { %457 = vmatpush.msra.mxu3 %v436_v1  ;;  %v417_v6 = vld [vmem:[%s1761_s2 + $0x60] sm:$0xff]  ;;  %s1034_s18 = sshll.u32 %s354_s28, 4  ;;  %v416_v9 = vld [vmem:[%s1761_s2 + $0x58] sm:$0xff]  ;;  %v415_v13 = vld [vmem:[%s1761_s2 + $0x50] sm:$0xff]  ;;  %vm927_vm5 = vcmask 1045504   ;;  %s935_s17 = scalar_lea.sflag [#allocation3], %s1779_s12 }
  0x18   : > { %438 = vmatpush.msra.mxu2 %v419_v2  ;;  %v433_v7 = vld [vmem:[%s1761_s2 + $0xe0] sm:$0xff]  ;;  %s357_s25 = scalar_lea.vmem %s1759_s0, %s1034_s18  ;;  %v432_v12 = vld [vmem:[%s1761_s2 + $0xd8] sm:$0xff]  ;;  %v431_v14 = vld [vmem:[%s1761_s2 + $0xd0] sm:$0xff] }
  0x19   : > { %458 = vmatpush.msra.mxu3 %v435_v3  ;;  %v360_v8 = vld [vmem:[%s1760_s1] sm:$0xff]  ;;  %v359_v11 = vld [vmem:[%s357_s25 + $0x8] sm:$0xff]  ;;  %v412_v19 = vld [vmem:[%s1761_s2 + $0x38] sm:$0xff] }
  0x1a   : > { %439 = vmatpush.msra.mxu2 %v418_v4  ;;  %v358_v10 = vld [vmem:[%s357_s25] sm:$0xff]  ;;  %400 = vmatpush.msra.mxu1 %v359_v11  ;;  %931 = vst [vmem:[%s1287_s30 + $0x8] sm:$0xff] %v359_v11  ;;  %v414_v15 = vld [vmem:[%s1761_s2 + $0x48] sm:$0xff]  ;;  %v428_v20 = vld [vmem:[%s1761_s2 + $0xb8] sm:$0xff]  ;;  %s946_s25 = scalar_lea.hbm %s1769_s10, %s1035_s29 }
  0x1b   : > { %459 = vmatpush.msra.mxu3 %v434_v5  ;;  %380 = vmatpush.msra.mxu0 %v358_v10  ;;  %930 = vst [vmem:[%s1287_s30] sm:$0xff] %v358_v10  ;;  %v430_v16 = vld [vmem:[%s1761_s2 + $0xc8] sm:$0xff]  ;;  %v413_v17 = vld [vmem:[%s1761_s2 + $0x40] sm:$0xff]  ;;  %v411_v21 = vld [vmem:[%s1761_s2 + $0x30] sm:$0xff]  ;;  %s949_s20 = sshll.u32 %s946_s25, 4  ;;  %s950_s20 = int_to_ptr.hbm [resolvable:$true] %s949_s20 }
  0x1c   : > { %440 = vmatpush.msra.mxu2 %v417_v6  ;;  %1019 = vmatmul.msk.f32.vlgmr.msra.gmra.mxu0 %vm361_vm0, %v360_v8  ;;  %v429_v18 = vld [vmem:[%s1761_s2 + $0xc0] sm:$0xff]  ;;  %v427_v22 = vld [vmem:[%s1761_s2 + $0xb0] sm:$0xff]  ;;  %v410_v23 = vld [vmem:[%s1761_s2 + $0x28] sm:$0xff]  ;;  %s1091_s18 = sshra.s32 %s950_s20, 4  ;;  %s1092_s18 = int_to_ptr.hbm [resolvable:$true] %s1091_s18 }
  0x1d   : > { %460 = vmatpush.msra.mxu3 %v433_v7  ;;  %1020 = vmatmul.msk.f32.vlgmr.msra.gmra.mxu1 %vm361_vm0, %v360_v8  ;;  %v426_v24 = vld [vmem:[%s1761_s2 + $0xa8] sm:$0xff]  ;;  %v409_v25 = vld [vmem:[%s1761_s2 + $0x20] sm:$0xff]  ;;  %v408_v27 = vld [vmem:[%s1761_s2 + $0x18] sm:$0xff]  ;;  %s1093_s22 = scalar_lea.hbm %s1092_s18, 32  ;;  %p1098_p0 = scmp.lt.s32.totalorder %s1092_s18, %s1769_s10 }
  0x1e   : > { %441 = vmatpush.msra.mxu2 %v416_v9  ;;  %v425_v26 = vld [vmem:[%s1761_s2 + $0xa0] sm:$0xff]  ;;  %v424_v28 = vld [vmem:[%s1761_s2 + $0x98] sm:$0xff]  ;;  %v407_v29 = vld [vmem:[%s1761_s2 + $0x10] sm:$0xff]  ;;  %p1094_p11 = scmp.ne.s32.totalorder %s1092_s18, %s1093_s22  ;;  %p1099_p1 = scmp.lt.s32.totalorder %s1097_s27, %s1093_s22 }
  0x1f   : > { %461 = vmatpush.msra.mxu3 %v432_v12  ;;  %v423_v30 = vld [vmem:[%s1761_s2 + $0x90] sm:$0xff]  ;;  %v406_v31 = vld [vmem:[%s1761_s2 + $0x8] sm:$0xff]  ;;  %v405_v33 = vld [vmem:[%s1761_s2] sm:$0xff] }
  0x20   : > { %442 = vmatpush.msra.mxu2 %v415_v13  ;;  %v422_v32 = vld [vmem:[%s1761_s2 + $0x88] sm:$0xff]  ;;  %v421_v34 = vld [vmem:[%s1761_s2 + $0x80] sm:$0xff]  ;;  %v538_v37 = vld [vmem:[%s1762_s3 + $0x78] sm:$0xff]  ;;  %p1095_p12 = pnand %p1094_p11, %p1236_p5  ;;  %p1100_p2 = por %p1099_p1, %p1098_p0 }
  0x21   : > { %462 = vmatpush.msra.mxu3 %v431_v14  ;;  %v478_v35 = vld [vmem:[%s1765_s6] sm:$0xff]  ;;  %v479_v36 = vld [vmem:[%s1765_s6 + $0x8] sm:$0xff]  ;;  %v554_v38 = vld [vmem:[%s1762_s3 + $0xf8] sm:$0xff] }
  0x22   : > { %443 = vmatpush.msra.mxu2 %v414_v15  ;;  %498 = vmatpush.msrb.mxu0 %v478_v35  ;;  %v537_v39 = vld [vmem:[%s1762_s3 + $0x70] sm:$0xff]  ;;  %v536_v41 = vld [vmem:[%s1762_s3 + $0x68] sm:$0xff]  ;;  %v535_v43 = vld [vmem:[%s1762_s3 + $0x60] sm:$0xff]  ;;  %p1096_p13 = pneg %p1095_p12 }
  0x23   : > { %463 = vmatpush.msra.mxu3 %v430_v16  ;;  %518 = vmatpush.msrb.mxu1 %v479_v36  ;;  %v553_v40 = vld [vmem:[%s1762_s3 + $0xf0] sm:$0xff]  ;;  %v552_v42 = vld [vmem:[%s1762_s3 + $0xe8] sm:$0xff]  ;;  %v551_v44 = vld [vmem:[%s1762_s3 + $0xe0] sm:$0xff] }
  0x24   : > { %444 = vmatpush.msra.mxu2 %v413_v17  ;;  %561 = vmatpush.msra.mxu0 %v538_v37  ;;  %v534_v45 = vld [vmem:[%s1762_s3 + $0x58] sm:$0xff]  ;;  %v533_v47 = vld [vmem:[%s1762_s3 + $0x50] sm:$0xff]  ;;  %v532_v49 = vld [vmem:[%s1762_s3 + $0x48] sm:$0xff]  ;;  %p1101_p3 = pnand %p1100_p2, %p1096_p13 }
  0x25   : > { %464 = vmatpush.msra.mxu3 %v429_v18  ;;  %581 = vmatpush.msra.mxu1 %v554_v38  ;;  %v550_v46 = vld [vmem:[%s1762_s3 + $0xd8] sm:$0xff]  ;;  %v549_v48 = vld [vmem:[%s1762_s3 + $0xd0] sm:$0xff]  ;;  %v548_v50 = vld [vmem:[%s1762_s3 + $0xc8] sm:$0xff] }
  0x26   : > { %445 = vmatpush.msra.mxu2 %v412_v19  ;;  %562 = vmatpush.msra.mxu0 %v537_v39  ;;  %v531_v51 = vld [vmem:[%s1762_s3 + $0x40] sm:$0xff]  ;;  %v530_v53 = vld [vmem:[%s1762_s3 + $0x38] sm:$0xff]  ;;  %v529_v57 = vld [vmem:[%s1762_s3 + $0x30] sm:$0xff] }
  0x27   : > { %465 = vmatpush.msra.mxu3 %v428_v20  ;;  %582 = vmatpush.msra.mxu1 %v553_v40  ;;  %v547_v52 = vld [vmem:[%s1762_s3 + $0xc0] sm:$0xff]  ;;  %v546_v54 = vld [vmem:[%s1762_s3 + $0xb8] sm:$0xff]  ;;  %v545_v58 = vld [vmem:[%s1762_s3 + $0xb0] sm:$0xff] }
  0x28   : > { %446 = vmatpush.msra.mxu2 %v411_v21  ;;  %563 = vmatpush.msra.mxu0 %v536_v41  ;;  %v528_v59 = vld [vmem:[%s1762_s3 + $0x28] sm:$0xff]  ;;  %v527_v61 = vld [vmem:[%s1762_s3 + $0x20] sm:$0xff]  ;;  %v526_v63 = vld [vmem:[%s1762_s3 + $0x18] sm:$0xff] }
  0x29   : > { %466 = vmatpush.msra.mxu3 %v427_v22  ;;  %583 = vmatpush.msra.mxu1 %v552_v42  ;;  %v544_v60 = vld [vmem:[%s1762_s3 + $0xa8] sm:$0xff]  ;;  %v543_v62 = vld [vmem:[%s1762_s3 + $0xa0] sm:$0xff]  ;;  %v542_v0 = vld [vmem:[%s1762_s3 + $0x98] sm:$0xff] }
  0x2a   : > { %447 = vmatpush.msra.mxu2 %v410_v23  ;;  %564 = vmatpush.msra.mxu0 %v535_v43  ;;  %v525_v1 = vld [vmem:[%s1762_s3 + $0x10] sm:$0xff]  ;;  %v524_v3 = vld [vmem:[%s1762_s3 + $0x8] sm:$0xff]  ;;  %v523_v5 = vld [vmem:[%s1762_s3] sm:$0xff] }
  0x2b   : > { %467 = vmatpush.msra.mxu3 %v426_v24  ;;  %584 = vmatpush.msra.mxu1 %v551_v44  ;;  %v541_v2 = vld [vmem:[%s1762_s3 + $0x90] sm:$0xff]  ;;  %v540_v4 = vld [vmem:[%s1762_s3 + $0x88] sm:$0xff]  ;;  %v539_v6 = vld [vmem:[%s1762_s3 + $0x80] sm:$0xff] }
  0x2c   : > { %448 = vmatpush.msra.mxu2 %v409_v25  ;;  %565 = vmatpush.msra.mxu0 %v534_v45  ;;  %v602_v7 = vld [vmem:[%s1766_s7] sm:$0xff]  ;;  %v603_v8 = vld [vmem:[%s1766_s7 + $0x8] sm:$0xff]  ;;  %v662_v9 = vld [vmem:[%s1763_s4 + $0x78] sm:$0xff] }
  0x2d   : > { %468 = vmatpush.msra.mxu3 %v425_v26  ;;  %585 = vmatpush.msra.mxu1 %v550_v46  ;;  %v678_v10 = vld [vmem:[%s1763_s4 + $0xf8] sm:$0xff]  ;;  %v661_v11 = vld [vmem:[%s1763_s4 + $0x70] sm:$0xff]  ;;  %v660_v13 = vld [vmem:[%s1763_s4 + $0x68] sm:$0xff] }
  0x2e   : > { %449 = vmatpush.msra.mxu2 %v408_v27  ;;  %566 = vmatpush.msra.mxu0 %v533_v47  ;;  %v677_v12 = vld [vmem:[%s1763_s4 + $0xf0] sm:$0xff]  ;;  %v676_v14 = vld [vmem:[%s1763_s4 + $0xe8] sm:$0xff]  ;;  %v659_v15 = vld [vmem:[%s1763_s4 + $0x60] sm:$0xff] }
  0x2f   : > { %469 = vmatpush.msra.mxu3 %v424_v28  ;;  %586 = vmatpush.msra.mxu1 %v549_v48  ;;  %v675_v16 = vld [vmem:[%s1763_s4 + $0xe0] sm:$0xff]  ;;  %v658_v17 = vld [vmem:[%s1763_s4 + $0x58] sm:$0xff]  ;;  %v657_v25 = vld [vmem:[%s1763_s4 + $0x50] sm:$0xff] }
  0x30   : > { %450 = vmatpush.msra.mxu2 %v407_v29  ;;  %567 = vmatpush.msra.mxu0 %v532_v49  ;;  %v674_v18 = vld [vmem:[%s1763_s4 + $0xd8] sm:$0xff]  ;;  %v673_v26 = vld [vmem:[%s1763_s4 + $0xd0] sm:$0xff]  ;;  %v656_v27 = vld [vmem:[%s1763_s4 + $0x48] sm:$0xff] }
  0x31   : > { %470 = vmatpush.msra.mxu3 %v423_v30  ;;  %587 = vmatpush.msra.mxu1 %v548_v50  ;;  %v672_v28 = vld [vmem:[%s1763_s4 + $0xc8] sm:$0xff]  ;;  %v655_v29 = vld [vmem:[%s1763_s4 + $0x40] sm:$0xff]  ;;  %v650_v39 = vld [vmem:[%s1763_s4 + $0x18] sm:$0xff] }
  0x32   : > { %451 = vmatpush.msra.mxu2 %v406_v31  ;;  %568 = vmatpush.msra.mxu0 %v531_v51  ;;  %v671_v30 = vld [vmem:[%s1763_s4 + $0xc0] sm:$0xff]  ;;  %v654_v31 = vld [vmem:[%s1763_s4 + $0x38] sm:$0xff]  ;;  %v652_v35 = vld [vmem:[%s1763_s4 + $0x28] sm:$0xff] }
  0x33   : > { %471 = vmatpush.msra.mxu3 %v422_v32  ;;  %588 = vmatpush.msra.mxu1 %v547_v52  ;;  %v670_v32 = vld [vmem:[%s1763_s4 + $0xb8] sm:$0xff]  ;;  %v668_v36 = vld [vmem:[%s1763_s4 + $0xa8] sm:$0xff]  ;;  %v651_v37 = vld [vmem:[%s1763_s4 + $0x20] sm:$0xff] }
  0x34   : > { %452 = vmatpush.msra.mxu2 %v405_v33  ;;  %569 = vmatpush.msra.mxu0 %v530_v53  ;;  %v653_v33 = vld [vmem:[%s1763_s4 + $0x30] sm:$0xff]  ;;  %v667_v38 = vld [vmem:[%s1763_s4 + $0xa0] sm:$0xff]  ;;  %v666_v40 = vld [vmem:[%s1763_s4 + $0x98] sm:$0xff] }
  0x35   : > { %472 = vmatpush.msra.mxu3 %v421_v34  ;;  %589 = vmatpush.msra.mxu1 %v546_v54  ;;  %v669_v34 = vld [vmem:[%s1763_s4 + $0xb0] sm:$0xff]  ;;  %v648_v43 = vld [vmem:[%s1763_s4 + $0x8] sm:$0xff]  ;;  %v647_v45 = vld [vmem:[%s1763_s4] sm:$0xff] }
  0x36   : > { %570 = vmatpush.msra.mxu0 %v529_v57  ;;  %622 = vmatpush.msrb.mxu2 %v602_v7  ;;  %v649_v41 = vld [vmem:[%s1763_s4 + $0x10] sm:$0xff]  ;;  %v664_v44 = vld [vmem:[%s1763_s4 + $0x88] sm:$0xff]  ;;  %v663_v46 = vld [vmem:[%s1763_s4 + $0x80] sm:$0xff] }
  0x37   : > { %590 = vmatpush.msra.mxu1 %v545_v58  ;;  %642 = vmatpush.msrb.mxu3 %v603_v8  ;;  %v665_v42 = vld [vmem:[%s1763_s4 + $0x90] sm:$0xff]  ;;  %v727_v48 = vld [vmem:[%s1767_s8 + $0x18] sm:$0xff]  ;;  %v724_v49 = vld [vmem:[%s1767_s8] sm:$0xff] }
  0x38   : > { %571 = vmatpush.msra.mxu0 %v528_v59  ;;  %v726_v47 = vld [vmem:[%s1767_s8 + $0x10] sm:$0xff]  ;;  %v725_v50 = vld [vmem:[%s1767_s8 + $0x8] sm:$0xff]  ;;  %v787_v51 = vld [vmem:[%s1764_s5 + $0x78] sm:$0xff] }
  0x39   : > { %591 = vmatpush.msra.mxu1 %v544_v60  ;;  %v803_v52 = vld [vmem:[%s1764_s5 + $0xf8] sm:$0xff]  ;;  %v786_v53 = vld [vmem:[%s1764_s5 + $0x70] sm:$0xff]  ;;  %v785_v57 = vld [vmem:[%s1764_s5 + $0x68] sm:$0xff] }
  0x3a   : > { %572 = vmatpush.msra.mxu0 %v527_v61  ;;  %v802_v54 = vld [vmem:[%s1764_s5 + $0xf0] sm:$0xff]  ;;  %v801_v58 = vld [vmem:[%s1764_s5 + $0xe8] sm:$0xff]  ;;  %v784_v59 = vld [vmem:[%s1764_s5 + $0x60] sm:$0xff] }
  0x3b   : > { %592 = vmatpush.msra.mxu1 %v543_v62  ;;  %v800_v60 = vld [vmem:[%s1764_s5 + $0xe0] sm:$0xff]  ;;  %v783_v61 = vld [vmem:[%s1764_s5 + $0x58] sm:$0xff]  ;;  %v782_v7 = vld [vmem:[%s1764_s5 + $0x50] sm:$0xff] }
  0x3c   : > { %573 = vmatpush.msra.mxu0 %v526_v63  ;;  %v799_v62 = vld [vmem:[%s1764_s5 + $0xd8] sm:$0xff]  ;;  %v798_v8 = vld [vmem:[%s1764_s5 + $0xd0] sm:$0xff] }
  0x3d   : > { %593 = vmatpush.msra.mxu1 %v542_v0 }
  0x3e   : > { %574 = vmatpush.msra.mxu0 %v525_v1 }
  0x3f   : > { %594 = vmatpush.msra.mxu1 %v541_v2 }
  0x40   : > { %575 = vmatpush.msra.mxu0 %v524_v3 }
  0x41   : > { %595 = vmatpush.msra.mxu1 %v540_v4 }
  0x42   : > { %576 = vmatpush.msra.mxu0 %v523_v5 }
  0x43   : > { %596 = vmatpush.msra.mxu1 %v539_v6 }
  0x99   : > { %v1419_v55 = vpop.f32.mrf.mxu0 }
  0x9a   : > { %v1421_v56 = vpop.f32.mrf.mxu1  ;;  %453 = vmatmul.f32.vlgmr.msra.gmra.mxu2 %v1419_v55  ;;  %v557_v23 = vrot.slane %v1419_v55, 2  ;;  %v679_v5 = vrot.slane %v1419_v55, 4 }
  0x9b   : > { %473 = vmatmul.f32.vlgmr.msra.gmra.mxu3 %v1421_v56  ;;  %683 = vmatpush.msra.mxu2 %v662_v9  ;;  %v558_v24 = vrot.slane %v1421_v56, 2  ;;  %v680_v6 = vrot.slane %v1421_v56, 4  ;;  %v781_v9 = vld [vmem:[%s1764_s5 + $0x48] sm:$0xff] }
  0x9c   : > { %703 = vmatpush.msra.mxu3 %v678_v10  ;;  %v797_v10 = vld [vmem:[%s1764_s5 + $0xc8] sm:$0xff] }
  0x9d   : > { %684 = vmatpush.msra.mxu2 %v661_v11  ;;  %v780_v11 = vld [vmem:[%s1764_s5 + $0x40] sm:$0xff] }
  0x9e   : > { %704 = vmatpush.msra.mxu3 %v677_v12  ;;  %v796_v12 = vld [vmem:[%s1764_s5 + $0xc0] sm:$0xff] }
  0x9f   : > { %685 = vmatpush.msra.mxu2 %v660_v13  ;;  %v779_v13 = vld [vmem:[%s1764_s5 + $0x38] sm:$0xff] }
  0xa0   : > { %705 = vmatpush.msra.mxu3 %v676_v14  ;;  %v795_v14 = vld [vmem:[%s1764_s5 + $0xb8] sm:$0xff] }
  0xa1   : > { %686 = vmatpush.msra.mxu2 %v659_v15  ;;  %v778_v15 = vld [vmem:[%s1764_s5 + $0x30] sm:$0xff] }
  0xa2   : > { %706 = vmatpush.msra.mxu3 %v675_v16  ;;  %v794_v16 = vld [vmem:[%s1764_s5 + $0xb0] sm:$0xff] }
  0xa3   : > { %687 = vmatpush.msra.mxu2 %v658_v17  ;;  %v777_v17 = vld [vmem:[%s1764_s5 + $0x28] sm:$0xff] }
  0xa4   : > { %707 = vmatpush.msra.mxu3 %v674_v18  ;;  %v793_v18 = vld [vmem:[%s1764_s5 + $0xa8] sm:$0xff] }
  0xa5   : > { %688 = vmatpush.msra.mxu2 %v657_v25  ;;  %v773_v25 = vld [vmem:[%s1764_s5 + $0x8] sm:$0xff] }
  0xa6   : > { %708 = vmatpush.msra.mxu3 %v673_v26  ;;  %v789_v26 = vld [vmem:[%s1764_s5 + $0x88] sm:$0xff] }
  0xa7   : > { %689 = vmatpush.msra.mxu2 %v656_v27  ;;  %v772_v27 = vld [vmem:[%s1764_s5] sm:$0xff] }
  0xa8   : > { %709 = vmatpush.msra.mxu3 %v672_v28  ;;  %v788_v28 = vld [vmem:[%s1764_s5 + $0x80] sm:$0xff] }
  0xa9   : > { %690 = vmatpush.msra.mxu2 %v655_v29 }
  0xaa   : > { %710 = vmatpush.msra.mxu3 %v671_v30 }
  0xab   : > { %691 = vmatpush.msra.mxu2 %v654_v31 }
  0xac   : > { %711 = vmatpush.msra.mxu3 %v670_v32 }
  0xad   : > { %692 = vmatpush.msra.mxu2 %v653_v33 }
  0xae   : > { %712 = vmatpush.msra.mxu3 %v669_v34 }
  0xaf   : > { %693 = vmatpush.msra.mxu2 %v652_v35  ;;  %v804_v35 = vrot.slane %v1419_v55, 6  ;;  %v856_v55 = vld [vmem:[%s1768_s9 + $0x38] sm:$0xff] }
  0xb0   : > { %713 = vmatpush.msra.mxu3 %v668_v36  ;;  %v805_v36 = vrot.slane %v1421_v56, 6  ;;  %v853_v56 = vld [vmem:[%s1768_s9 + $0x20] sm:$0xff] }
  0xb1   : > { %694 = vmatpush.msra.mxu2 %v651_v37  ;;  %v857_v37 = vld [vmem:[%s1768_s9 + $0x40] sm:$0xff] }
  0xb2   : > { %714 = vmatpush.msra.mxu3 %v667_v38  ;;  %v858_v38 = vld [vmem:[%s1768_s9 + $0x48] sm:$0xff] }
  0xb3   : > { %695 = vmatpush.msra.mxu2 %v650_v39  ;;  %v855_v39 = vld [vmem:[%s1768_s9 + $0x30] sm:$0xff] }
  0xb4   : > { %715 = vmatpush.msra.mxu3 %v666_v40  ;;  %v854_v40 = vld [vmem:[%s1768_s9 + $0x28] sm:$0xff] }
  0xb5   : > { %696 = vmatpush.msra.mxu2 %v649_v41  ;;  %v851_v41 = vld [vmem:[%s1768_s9 + $0x10] sm:$0xff] }
  0xb6   : > { %716 = vmatpush.msra.mxu3 %v665_v42  ;;  %v852_v42 = vld [vmem:[%s1768_s9 + $0x18] sm:$0xff] }
  0xb7   : > { %697 = vmatpush.msra.mxu2 %v648_v43  ;;  %v849_v43 = vld [vmem:[%s1768_s9] sm:$0xff] }
  0xb8   : > { %717 = vmatpush.msra.mxu3 %v664_v44  ;;  %v850_v44 = vld [vmem:[%s1768_s9 + $0x8] sm:$0xff] }
  0xb9   : > { %698 = vmatpush.msra.mxu2 %v647_v45 }
  0xba   : > { %718 = vmatpush.msra.mxu3 %v663_v46 }
 0x11d   : > { %v454_v19 = vpop.f32.mrf.mxu2 }
 0x11e   : > { %v474_v20 = vpop.f32.mrf.mxu3 }
 0x11f   : > { %v475_v21 = vadd.f32 %v474_v20, %v454_v19  ;;  %v776_v19 = vld [vmem:[%s1764_s5 + $0x20] sm:$0xff] }
 0x120   : > { %v792_v20 = vld [vmem:[%s1764_s5 + $0xa0] sm:$0xff] }
 0x121   : > { %v477_v22 = vmax.f32 %v475_v21, 0.0  ;;  %v775_v21 = vld [vmem:[%s1764_s5 + $0x18] sm:$0xff] }
 0x123   : > { %1021 = vmatmul.msk.f32.vlgmr.msrb.gmra.mxu0 %vm361_vm0, %v477_v22  ;;  %1022 = vmatmul.msk.f32.vlgmr.msrb.gmra.mxu1 %vm361_vm0, %v477_v22  ;;  %v791_v22 = vld [vmem:[%s1764_s5 + $0x98] sm:$0xff] }
 0x124   : > { %746 = vmatpush.msrb.mxu0 %v726_v47  ;;  %766 = vmatpush.msrb.mxu1 %v727_v48 }
 0x126   : > { %747 = vmatpush.msrb.mxu0 %v724_v49  ;;  %767 = vmatpush.msrb.mxu1 %v725_v50 }
 0x12b   : > { %577 = vmatmul.f32.vlgmr.msra.gmra.mxu0 %v557_v23  ;;  %597 = vmatmul.f32.vlgmr.msra.gmra.mxu1 %v558_v24  ;;  %v774_v23 = vld [vmem:[%s1764_s5 + $0x10] sm:$0xff] }
 0x12c   : > { %808 = vmatpush.msra.mxu0 %v787_v51  ;;  %828 = vmatpush.msra.mxu1 %v803_v52  ;;  %v790_v24 = vld [vmem:[%s1764_s5 + $0x90] sm:$0xff] }
 0x12e   : > { %809 = vmatpush.msra.mxu0 %v786_v53  ;;  %829 = vmatpush.msra.mxu1 %v802_v54 }
 0x130   : > { %810 = vmatpush.msra.mxu0 %v785_v57  ;;  %830 = vmatpush.msra.mxu1 %v801_v58 }
 0x132   : > { %811 = vmatpush.msra.mxu0 %v784_v59  ;;  %831 = vmatpush.msra.mxu1 %v800_v60 }
 0x134   : > { %812 = vmatpush.msra.mxu0 %v783_v61  ;;  %832 = vmatpush.msra.mxu1 %v799_v62 }
 0x136   : > { %813 = vmatpush.msra.mxu0 %v782_v7  ;;  %833 = vmatpush.msra.mxu1 %v798_v8 }
 0x138   : > { %814 = vmatpush.msra.mxu0 %v781_v9  ;;  %834 = vmatpush.msra.mxu1 %v797_v10 }
 0x13a   : > { %815 = vmatpush.msra.mxu0 %v780_v11  ;;  %835 = vmatpush.msra.mxu1 %v796_v12 }
 0x13c   : > { %816 = vmatpush.msra.mxu0 %v779_v13  ;;  %836 = vmatpush.msra.mxu1 %v795_v14 }
 0x13e   : > { %817 = vmatpush.msra.mxu0 %v778_v15  ;;  %837 = vmatpush.msra.mxu1 %v794_v16 }
 0x140   : > { %818 = vmatpush.msra.mxu0 %v777_v17  ;;  %838 = vmatpush.msra.mxu1 %v793_v18 }
 0x142   : > { %819 = vmatpush.msra.mxu0 %v776_v19  ;;  %839 = vmatpush.msra.mxu1 %v792_v20 }
 0x144   : > { %820 = vmatpush.msra.mxu0 %v775_v21  ;;  %840 = vmatpush.msra.mxu1 %v791_v22 }
 0x146   : > { %821 = vmatpush.msra.mxu0 %v774_v23  ;;  %841 = vmatpush.msra.mxu1 %v790_v24 }
 0x148   : > { %822 = vmatpush.msra.mxu0 %v773_v25  ;;  %842 = vmatpush.msra.mxu1 %v789_v26 }
 0x14a   : > { %823 = vmatpush.msra.mxu0 %v772_v27  ;;  %843 = vmatpush.msra.mxu1 %v788_v28 }
 0x1a0   : > { %v1615_v63 = vpop.f32.mrf.mxu0  ;;  %v1617_v0 = vpop.f32.mrf.mxu1 }
 0x1a8   : > { %v578_v1 = vpop.f32.mrf.mxu0  ;;  %v598_v2 = vpop.f32.mrf.mxu1 }
 0x1a9   : > { %v599_v3 = vadd.f32 %v598_v2, %v578_v1 }
 0x1ab   : > { %v601_v4 = vmax.f32 %v599_v3, 0.0 }
 0x1ad   : > { %1023 = vmatmul.msk.f32.vlgmr.msrb.gmra.mxu2 %vm361_vm0, %v601_v4  ;;  %1024 = vmatmul.msk.f32.vlgmr.msrb.gmra.mxu3 %vm361_vm0, %v601_v4 }
 0x1ae   : > { %874 = vmatpush.msrb.mxu2 %v857_v37  ;;  %894 = vmatpush.msrb.mxu3 %v858_v38 }
 0x1b0   : > { %875 = vmatpush.msrb.mxu2 %v855_v39  ;;  %895 = vmatpush.msrb.mxu3 %v856_v55 }
 0x1b2   : > { %876 = vmatpush.msrb.mxu2 %v853_v56  ;;  %896 = vmatpush.msrb.mxu3 %v854_v40 }
 0x1b4   : > { %877 = vmatpush.msrb.mxu2 %v851_v41  ;;  %897 = vmatpush.msrb.mxu3 %v852_v42 }
 0x1b5   : > { %699 = vmatmul.f32.vlgmr.msra.gmra.mxu2 %v679_v5  ;;  %719 = vmatmul.f32.vlgmr.msra.gmra.mxu3 %v680_v6 }
 0x1b6   : > { %878 = vmatpush.msrb.mxu2 %v849_v43  ;;  %898 = vmatpush.msrb.mxu3 %v850_v44 }
 0x230   : > { %v624_v29 = vpop.f32.mrf.mxu2  ;;  %v644_v30 = vpop.f32.mrf.mxu3 }
 0x231   : > { %v905_v45 = vrot.slane %v624_v29, 6  ;;  %v906_v46 = vrot.slane %v644_v30, 6 }
 0x233   : > { %v922_v51 = vsel %vm921_vm2, %v1615_v63, %v905_v45  ;;  %v923_v52 = vsel %vm921_vm2, %v1617_v0, %v906_v46 }
 0x238   : > { %v700_v31 = vpop.f32.mrf.mxu2  ;;  %v720_v32 = vpop.f32.mrf.mxu3 }
 0x239   : > { %v721_v33 = vadd.f32 %v720_v32, %v700_v31 }
 0x23b   : > { %v723_v34 = vmax.f32 %v721_v33, 0.0 }
 0x23d   : > { %1025 = vmatmul.msk.f32.vlgmr.msrb.gmra.mxu0 %vm728_vm1, %v723_v34  ;;  %1026 = vmatmul.msk.f32.vlgmr.msrb.gmra.mxu1 %vm728_vm1, %v723_v34 }
 0x245   : > { %824 = vmatmul.f32.vlgmr.msra.gmra.mxu0 %v804_v35  ;;  %844 = vmatmul.f32.vlgmr.msra.gmra.mxu1 %v805_v36 }
 0x2ba   : > { %v749_v47 = vpop.f32.mrf.mxu0  ;;  %v769_v48 = vpop.f32.mrf.mxu1 }
 0x2bb   : > { %v911_v49 = vrot.slane %v749_v47, 4  ;;  %v912_v50 = vrot.slane %v769_v48, 4 }
 0x2bd   : > { %v925_v53 = vsel %vm924_vm3, %v922_v51, %v911_v49  ;;  %v926_v54 = vsel %vm924_vm3, %v923_v52, %v912_v50 }
 0x2c2   : > { %v825_v57 = vpop.f32.mrf.mxu0  ;;  %v845_v58 = vpop.f32.mrf.mxu1 }
 0x2c3   : > { %v846_v59 = vadd.f32 %v845_v58, %v825_v57 }
 0x2c5   : > { %v848_v60 = vmax.f32 %v846_v59, 0.0 }
 0x2c7   : > { %1027 = vmatmul.msk.f32.vlgmr.msrb.gmra.mxu2 %vm859_vm4, %v848_v60  ;;  %1028 = vmatmul.msk.f32.vlgmr.msrb.gmra.mxu3 %vm859_vm4, %v848_v60 }
 0x34a   : > { %v880_v61 = vpop.f32.mrf.mxu2  ;;  %v900_v62 = vpop.f32.mrf.mxu3 }
 0x34b   : > { %v917_v63 = vrot.slane %v880_v61, 2  ;;  %v918_v0 = vrot.slane %v900_v62, 2 }
 0x34d   : > { %v928_v1 = vsel %vm927_vm5, %v925_v53, %v917_v63  ;;  %v929_v2 = vsel %vm927_vm5, %v926_v54, %v918_v0 }
 0x34e   : > { %932 = vst [vmem:[%s1287_s30 + $0x10] sm:$0xff] %v928_v1 }
 0x34f   : > { %933 = vst [vmem:[%s1287_s30 + $0x18] sm:$0xff] %v929_v2 }
 0x350   : > { %1104 = shalt.err (!%p1101_p3)
}
 0x351   : > { %s1141_s30 = smov 256   ;;  %s1142_s15 = smov 16  }
 0x352   : > { %1036 = dma.vmem_to_hbm [thread:$0]  (%p1236_p5), %s948_s11, 512, %s950_s20, %s935_s17, %s1141_s30, %s1141_s30, %s1142_s15  }
 0x353 PF: > { %p1042_p4 = scmp.ge.s32.totalorder %s1139_s16, 2  ;;  %s964_s19 = sand.u32 1, %s1127_s13  }
 0x354   : > { %s965_s25 = scalar_lea.sflag [#allocation3], %s964_s19 }
 0x355   : > { %p1039_p7 = pnand %p1042_p4, %p1240_p6 }
 0x357   : > { %p1040_p8 = pneg %p1039_p7 }
 0x359   : > { %1122 = dma.done.wait (%p1040_p8), %s965_s25, 512  }
 0x35a   : > { %1124 = vsyncadd (%p1040_p8), %s965_s25, 4294966784  ;;  %s1780_s16 = sld [smem:[#allocation6_spill]]  ;;  %s1783_s13 = smov %s1131_s14 }
 0x35b   : > { %s1781_s12 = sld [smem:[#allocation5_spill]] }
 0x35c   : > { %s1782_s15 = sld [smem:[#allocation7_spill]] }
 0x360   : > { %p20_p9 = scmp.ge.s32.totalorder %s1780_s16, 4  }
 0x361   : > { %s1784_s14 = smov %s1781_s12 }
 0x362   :  { %22 = sbr.rel (!%p20_p9) target bundleno = 3 (0x3), region = 95 }
 0x367   :  { %971 = vsyncpa [#allocation3], 1 }
 0x368   :  { %973 = vsyncpa [#allocation3 + $0x1], 1 }

</bundles_post_ra>
